<compile_context>
chip_gen: v7x
topology: tpu7x:2x2x1
jax: 0.10.0
libtpu: 0.0.40
codegen_flags: <defaults>
</compile_context>

<pallas_src>
import functools

import jax
import jax.numpy as jnp
from jax import lax
from jax.experimental import pallas as pl
from jax.experimental.pallas import tpu as pltpu

_LANES = 1024          # lane-dense slab width (multiple of 128 -> unmasked wide vst)
_MAX_BLOCK_ROWS = 512  # 512 x 1024 x 4B = 2 MiB per f32 tile


def _dropout_kernel(seed_ref, x_ref, o_ref, *, threshold: int, scale: float):
    """Elementwise dropout using a counter-based hash RNG (pure VPU int ops)."""
    blk_rows, lanes = x_ref.shape

    # Global flattened element index for this block (grid-invariant).
    row = lax.broadcasted_iota(jnp.int32, x_ref.shape, 0) + pl.program_id(0) * blk_rows
    col = lax.broadcasted_iota(jnp.int32, x_ref.shape, 1)
    idx = (row * lanes + col).astype(jnp.uint32)

    # Mix in the seed, then the lowbias32 finalizer hash.
    h = idx + seed_ref[0].astype(jnp.uint32) * jnp.uint32(0x9E3779B9)
    h = h ^ (h >> 16)
    h = h * jnp.uint32(0x7FEB352D)
    h = h ^ (h >> 15)
    h = h * jnp.uint32(0x846CA68B)
    h = h ^ (h >> 16)

    # Integer threshold compare: P(h < threshold) == p.
    keep = h >= jnp.uint32(threshold)

    x = x_ref[...]
    scaled = x * jnp.asarray(scale, dtype=x.dtype)   # scale in native dtype
    o_ref[...] = jnp.where(keep, scaled, jnp.zeros_like(scaled))


def pallas_dropout(x, p=0.5, training=True, seed=0):
    """Pallas TPU implementation of F.dropout(x, p, training, inplace=False)."""
    if not training or p == 0.0:
        return x
    if p == 1.0:
        return jnp.zeros_like(x)
    if not (0.0 < p < 1.0):
        raise ValueError(f"dropout probability must be in [0, 1], got {p}")

    orig_shape = x.shape
    dtype = x.dtype

    flat = x.reshape(-1)
    n = flat.shape[0]

    # Pad only when the element count is not 1024-aligned (aligned inputs take
    # a single HBM pass, no extra pad/slice traffic).
    n_pad = pl.cdiv(n, _LANES) * _LANES
    if n_pad != n:
        flat = jnp.pad(flat, (0, n_pad - n))
    rows = n_pad // _LANES
    x2d = flat.reshape(rows, _LANES)

    # Tile: up to 512 sublane rows x 1024 lanes (~2 MiB @ f32).  block_rows is
    # either a multiple of 8 or the full row extent, satisfying (8,128) rules.
    block_rows = rows if rows <= _MAX_BLOCK_ROWS else _MAX_BLOCK_ROWS
    grid = (pl.cdiv(rows, block_rows),)

    threshold = min(int(round(float(p) * (1 << 32))), (1 << 32) - 1)
    scale = 1.0 / (1.0 - float(p))

    seed_arr = jnp.asarray([seed], dtype=jnp.int32)

    out2d = pl.pallas_call(
        functools.partial(_dropout_kernel, threshold=threshold, scale=scale),
        out_shape=jax.ShapeDtypeStruct((rows, _LANES), dtype),
        grid_spec=pltpu.PrefetchScalarGridSpec(
            num_scalar_prefetch=1,
            grid=grid,
            in_specs=[pl.BlockSpec((block_rows, _LANES), lambda i, seed: (i, 0))],
            out_specs=pl.BlockSpec((block_rows, _LANES), lambda i, seed: (i, 0)),
        ),
        compiler_params=pltpu.CompilerParams(
            dimension_semantics=("parallel",)),
    )(seed_arr, x2d)

    if n_pad != n:
        return out2d.reshape(-1)[:n].reshape(orig_shape)
    return out2d.reshape(orig_shape)


class DropoutModule:
    """JAX/Pallas equivalent of the PyTorch Dropout_module."""

    def __call__(self, x, p=0.5, training=True, inplace=False, seed=0):
        # inplace is ignored (the PyTorch module always passes inplace=False).
        return pallas_dropout(x, p=p, training=training, seed=seed)


if __name__ == "__main__":
    key = jax.random.PRNGKey(0)
    x = jax.random.normal(key, (2, 4, 16, 16), dtype=jnp.float32)

    mod = DropoutModule()
    p = 0.5
    y = mod(x, p=p, training=True, seed=42)
    y = jax.block_until_ready(y)

    # Sanity checks on dropout semantics.
    assert y.shape == x.shape and y.dtype == x.dtype
    kept = y != 0.0
    # Kept elements must equal x / (1 - p).
    assert jnp.allclose(jnp.where(kept, y, 0.0),
                        jnp.where(kept, x / (1.0 - p), 0.0),
                        rtol=1e-5, atol=1e-5)
    keep_frac = jnp.mean(kept.astype(jnp.float32))
    assert 0.3 < float(keep_frac) < 0.7, f"unexpected keep fraction {keep_frac}"

    # Eval mode / p=0 must be identity; p=1 must be all zeros.
    y_eval = jax.block_until_ready(mod(x, p=p, training=False))
    assert jnp.array_equal(y_eval, x)
    y_p1 = jax.block_until_ready(mod(x, p=1.0, training=True))
    assert not jnp.any(y_p1)

    print("KERNEL_OK")
</pallas_src>

<mosaic_0001>
module attributes {stable_mosaic.version = 11 : i64} {
  func.func @_dropout_kernel(%arg0: i32, %arg1: memref<1xi32, #tpu.memory_space<smem>>, %arg2: memref<2x1024xf32, #tpu.memory_space<vmem>>, %arg3: memref<2x1024xf32, #tpu.memory_space<vmem>>) attributes {dimension_semantics = [#tpu.dimension_semantics<parallel>], iteration_bounds = array<i64: 1>, scalar_prefetch = 1 : i64, scratch_operands = 0 : i64, tpu.core_type = #tpu.core_type<tc>, window_params = [{transform_indices = @transform_0, window_bounds = array<i64: 2, 1024>}, {transform_indices = @transform_1, window_bounds = array<i64: 2, 1024>}]} {
    %0 = tpu.iota {dimensions = array<i32: 0>} : vector<2x1024xi32>
    %c2_i32 = arith.constant 2 : i32
    %1 = arith.muli %arg0, %c2_i32 : i32
    %2 = vector.broadcast %1 : i32 to vector<2x1024xi32>
    %3 = arith.addi %0, %2 : vector<2x1024xi32>
    %4 = tpu.iota {dimensions = array<i32: 1>} : vector<2x1024xi32>
    %c1024_i32 = arith.constant 1024 : i32
    %5 = vector.broadcast %c1024_i32 : i32 to vector<2x1024xi32>
    %6 = arith.muli %3, %5 : vector<2x1024xi32>
    %7 = arith.addi %6, %4 : vector<2x1024xi32>
    %c0 = arith.constant 0 : index
    %8 = memref.load %arg1[%c0] : memref<1xi32, #tpu.memory_space<smem>>
    %c-1640531527_i32 = arith.constant -1640531527 : i32
    %9 = arith.muli %8, %c-1640531527_i32 : i32
    %10 = vector.broadcast %9 : i32 to vector<2x1024xi32>
    %11 = arith.addi %7, %10 : vector<2x1024xi32>
    %c16_i32 = arith.constant 16 : i32
    %12 = vector.broadcast %c16_i32 : i32 to vector<2x1024xi32>
    %13 = arith.shrui %11, %12 : vector<2x1024xi32>
    %14 = arith.xori %11, %13 : vector<2x1024xi32>
    %c2146121005_i32 = arith.constant 2146121005 : i32
    %15 = vector.broadcast %c2146121005_i32 : i32 to vector<2x1024xi32>
    %16 = arith.muli %14, %15 : vector<2x1024xi32>
    %c15_i32 = arith.constant 15 : i32
    %17 = vector.broadcast %c15_i32 : i32 to vector<2x1024xi32>
    %18 = arith.shrui %16, %17 : vector<2x1024xi32>
    %19 = arith.xori %16, %18 : vector<2x1024xi32>
    %c-2073254261_i32 = arith.constant -2073254261 : i32
    %20 = vector.broadcast %c-2073254261_i32 : i32 to vector<2x1024xi32>
    %21 = arith.muli %19, %20 : vector<2x1024xi32>
    %c16_i32_0 = arith.constant 16 : i32
    %22 = vector.broadcast %c16_i32_0 : i32 to vector<2x1024xi32>
    %23 = arith.shrui %21, %22 : vector<2x1024xi32>
    %24 = arith.xori %21, %23 : vector<2x1024xi32>
    %c-2147483648_i32 = arith.constant -2147483648 : i32
    %25 = vector.broadcast %c-2147483648_i32 : i32 to vector<2x1024xi32>
    %26 = arith.cmpi uge, %24, %25 : vector<2x1024xi32>
    %c0_1 = arith.constant 0 : index
    %c0_2 = arith.constant 0 : index
    %27 = vector.load %arg2[%c0_1, %c0_2] : memref<2x1024xf32, #tpu.memory_space<vmem>>, vector<2x1024xf32>
    %cst = arith.constant 2.000000e+00 : f32
    %28 = vector.broadcast %cst : f32 to vector<2x1024xf32>
    %29 = arith.mulf %27, %28 : vector<2x1024xf32>
    %cst_3 = arith.constant 0.000000e+00 : f32
    %30 = vector.broadcast %cst_3 : f32 to vector<2x1024xf32>
    %31 = arith.select %26, %29, %30 : vector<2x1024xi1>, vector<2x1024xf32>
    %c0_4 = arith.constant 0 : index
    %c0_5 = arith.constant 0 : index
    %32 = vector.load %arg3[%c0_4, %c0_5] : memref<2x1024xf32, #tpu.memory_space<vmem>>, vector<2x1024xf32>
    tpu.vector_store %arg3[%c0_4, %c0_5], %31 {strides = array<i32>} : memref<2x1024xf32, #tpu.memory_space<vmem>>, vector<2x1024xf32>,
    return
  }
  func.func @transform_0(%arg0: i32, %arg1: memref<1xi32, #tpu.memory_space<smem>>) -> (i32, i32) {
    %c0_i32 = arith.constant 0 : i32
    %c0_i32_0 = arith.constant 0 : i32
    return %arg0, %c0_i32 : i32, i32
  }
  func.func @transform_1(%arg0: i32, %arg1: memref<1xi32, #tpu.memory_space<smem>>) -> (i32, i32) {
    %c0_i32 = arith.constant 0 : i32
    %c0_i32_0 = arith.constant 0 : i32
    return %arg0, %c0_i32 : i32, i32
  }
}

</mosaic_0001>

<bundles_post_ra>
// kernel: tpu_custom_call.1
= control target key start
LH: loop header
LB: loop body
LE: loop exit
PB: predicated region body
PF: predicated region fallthrough
CT: control target
= control target key end

     0   :  { %8 = vsyncpa [#allocation5], 0  ;;  %s362_s0 = inlined_call_operand.<no memory space> [shape: s32[1], index: 0, kind: input, shape index: {}]   ;;  %s363_s1 = inlined_call_operand.hbm [shape: f32[2,1024], index: 1, kind: input, shape index: {}]   ;;  %s364_s2 = inlined_call_operand.hbm [shape: f32[2,1024], index: 2, kind: output, shape index: {}]  }
   0x1   :  { %9 = vsyncpa [#allocation6], 0  ;;  %s297_s9 = smov [#allocation4]   ;;  %s249_s13 = scalar_lea.hbm %s363_s1, 256 }
   0x2   :  { %s16_s10 = sshll.u32 %s297_s9, 4  ;;  %p250_p0 = scmp.ne.s32.totalorder %s363_s1, %s249_s13  ;;  %s17_s10 = int_to_ptr.vmem [resolvable:$true] %s16_s10 }
   0x3   :  { %p253_p1 = scmp.lt.u32.totalorder %s249_s13, %s363_s1 }
   0x5   :  { %p255_p2 = pnand %p253_p1, %p250_p0 }
   0x7   :  { %258 = shalt.err (!%p255_p2)
}
   0x8   :  { %s259_s18 = scalar_lea.vmem %s17_s10, 256  ;;  %p264_p4 = scmp.lt.s32.totalorder %s17_s10, %s17_s10 }
   0x9   :  { %p260_p3 = scmp.ne.s32.totalorder %s17_s10, %s259_s18  ;;  %p265_p5 = scmp.lt.s32.totalorder %s259_s18, %s259_s18 }
   0xb   :  { %p266_p6 = por %p265_p5, %p264_p4 }
   0xd   :  { %p267_p7 = pnand %p266_p6, %p260_p3 }
   0xf   :  { %270 = shalt.err (!%p267_p7)
}
  0x10   :  { %19 = dma.hbm_to_vmem [thread:$0]  %s363_s1, 256, %s17_s10, [#allocation5]  }
  0x11   :  { %293 = dma.done.wait [#allocation5], 256  }
  0x12   :  { %294 = vsyncadd [#allocation5], 4294967040  ;;  %v23_v0 = vlaneseq  ;;  %s47_s23 = smul.u32 2654435769, %s362_s0  ;;  %v298_v1 = vmov 1983009808  }
  0x13   :  { %v137_v2 = vunpack.c.l.s4 %v298_v1  ;;  %v129_v19 = vld [vmem:[#allocation4] sm:$0xff]  ;;  %s299_s0 = smov [#allocation7]  }
  0x14   :  { %v24_v3 = vshrl.u32 %v23_v0, 7  ;;  %v29_v4 = vand.u32 127, %v23_v0  ;;  %v48_v5 = vstv %s47_s23  ;;  %v131_v28 = vmul.f32 2.0, %v129_v19  ;;  %s237_s1 = sshll.u32 %s299_s0, 4  ;;  %s238_s1 = int_to_ptr.vmem [resolvable:$true] %s237_s1 }
  0x15   :  { %v138_v6 = vunpack.c.0.s8 %v137_v2  ;;  %s271_s24 = scalar_lea.vmem %s238_s1, 256  ;;  %p276_p9 = scmp.lt.s32.totalorder %s238_s1, %s238_s1 }
  0x16   :  { %v30_v7 = vadd.s32 128, %v29_v4  ;;  %v31_v8 = vadd.s32 256, %v29_v4  ;;  %v32_v9 = vadd.s32 384, %v29_v4  ;;  %v37_v10 = vmul.u32 1024, %v24_v3  ;;  %p272_p8 = scmp.ne.s32.totalorder %s238_s1, %s271_s24  ;;  %p277_p10 = scmp.lt.s32.totalorder %s271_s24, %s271_s24 }
  0x17   :  { %v330_v11 = vsub.s32 %v138_v6, %v24_v3  ;;  %v33_v12 = vadd.s32 512, %v29_v4  ;;  %v34_v13 = vadd.s32 640, %v29_v4  ;;  %v35_v14 = vadd.s32 768, %v29_v4 }
  0x18   :  { %v38_v15 = vadd.s32 %v37_v10, %v29_v4  ;;  %v39_v16 = vadd.s32 %v37_v10, %v30_v7  ;;  %v40_v17 = vadd.s32 %v37_v10, %v31_v8  ;;  %v41_v18 = vadd.s32 %v37_v10, %v32_v9  ;;  %p278_p11 = por %p277_p10, %p276_p9 }
  0x19   :  { %v36_v20 = vadd.s32 896, %v29_v4  ;;  %v42_v21 = vadd.s32 %v37_v10, %v33_v12  ;;  %v43_v22 = vadd.s32 %v37_v10, %v34_v13  ;;  %v44_v23 = vadd.s32 %v37_v10, %v35_v14 }
  0x1a   :  { %v49_v24 = vadd.s32 %v48_v5, %v38_v15  ;;  %v50_v25 = vadd.s32 %v48_v5, %v39_v16  ;;  %v51_v26 = vadd.s32 %v48_v5, %v40_v17  ;;  %v52_v27 = vadd.s32 %v48_v5, %v41_v18  ;;  %p279_p12 = pnand %p278_p11, %p272_p8 }
  0x1b   :  { %v45_v29 = vadd.s32 %v37_v10, %v36_v20  ;;  %v53_v30 = vadd.s32 %v48_v5, %v42_v21  ;;  %v54_v31 = vadd.s32 %v48_v5, %v43_v22  ;;  %v135_v36 = vcombine.high %v131_v28, %v131_v28 }
  0x1c   :  { %v57_v32 = vshrl.u32 %v49_v24, 16  ;;  %v58_v33 = vshrl.u32 %v50_v25, 16  ;;  %v59_v34 = vshrl.u32 %v51_v26, 16  ;;  %v60_v35 = vshrl.u32 %v52_v27, 16 }
  0x1d   :  { %v333_v37 = vrot.slane %v131_v28, %v330_v11  ;;  %v55_v38 = vadd.s32 %v48_v5, %v44_v23  ;;  %v56_v39 = vadd.s32 %v48_v5, %v45_v29  ;;  %v336_v44 = vrot.slane %v135_v36, %v330_v11 }
  0x1e   :  { %v65_v40 = vxor.u32 %v57_v32, %v49_v24  ;;  %v66_v41 = vxor.u32 %v58_v33, %v50_v25  ;;  %v67_v42 = vxor.u32 %v59_v34, %v51_v26  ;;  %v68_v43 = vxor.u32 %v60_v35, %v52_v27 }
  0x1f   :  { %v150_v45 = vcombine.high %v333_v37, %v333_v37  ;;  %v61_v46 = vshrl.u32 %v53_v30, 16  ;;  %v62_v47 = vshrl.u32 %v54_v31, 16  ;;  %v63_v50 = vshrl.u32 %v55_v38, 16 }
  0x20   :  { %v73_v48 = vmul.u32 2146121005, %v65_v40  ;;  %v74_v49 = vmul.u32 2146121005, %v66_v41  ;;  %v64_v51 = vshrl.u32 %v56_v39, 16  ;;  %v151_v54 = vcombine.high %v336_v44, %v336_v44 }
  0x21   :  { %v75_v52 = vmul.u32 2146121005, %v67_v42  ;;  %v76_v53 = vmul.u32 2146121005, %v68_v43  ;;  %v69_v55 = vxor.u32 %v61_v46, %v53_v30  ;;  %v70_v58 = vxor.u32 %v62_v47, %v54_v31 }
  0x22   :  { %v81_v56 = vshrl.u32 %v73_v48, 15  ;;  %v82_v57 = vshrl.u32 %v74_v49, 15  ;;  %v71_v59 = vxor.u32 %v63_v50, %v55_v38  ;;  %v72_v62 = vxor.u32 %v64_v51, %v56_v39  ;;  %v130_v38 = vld [vmem:[#allocation4 + $0x8] sm:$0xff] }
  0x23   :  { %v83_v60 = vshrl.u32 %v75_v52, 15  ;;  %v84_v61 = vshrl.u32 %v76_v53, 15  ;;  %v77_v63 = vmul.u32 2146121005, %v69_v55  ;;  %v78_v2 = vmul.u32 2146121005, %v70_v58 }
  0x24   :  { %v89_v0 = vxor.u32 %v81_v56, %v73_v48  ;;  %v90_v1 = vxor.u32 %v82_v57, %v74_v49  ;;  %v79_v3 = vmul.u32 2146121005, %v71_v59  ;;  %v80_v6 = vmul.u32 2146121005, %v72_v62 }
  0x25   :  { %v91_v4 = vxor.u32 %v83_v60, %v75_v52  ;;  %v92_v5 = vxor.u32 %v84_v61, %v76_v53  ;;  %v85_v7 = vshrl.u32 %v77_v63, 15  ;;  %v86_v10 = vshrl.u32 %v78_v2, 15 }
  0x26   :  { %v97_v8 = vmul.u32 2221713035, %v89_v0  ;;  %v98_v9 = vmul.u32 2221713035, %v90_v1  ;;  %v87_v12 = vshrl.u32 %v79_v3, 15  ;;  %v88_v15 = vshrl.u32 %v80_v6, 15 }
  0x27   :  { %v99_v13 = vmul.u32 2221713035, %v91_v4  ;;  %v100_v14 = vmul.u32 2221713035, %v92_v5  ;;  %v93_v16 = vxor.u32 %v85_v7, %v77_v63  ;;  %v94_v19 = vxor.u32 %v86_v10, %v78_v2 }
  0x28   :  { %v105_v17 = vshrl.u32 %v97_v8, 16  ;;  %v106_v18 = vshrl.u32 %v98_v9, 16  ;;  %v95_v20 = vxor.u32 %v87_v12, %v79_v3  ;;  %v96_v23 = vxor.u32 %v88_v15, %v80_v6 }
  0x29   :  { %v107_v21 = vshrl.u32 %v99_v13, 16  ;;  %v108_v22 = vshrl.u32 %v100_v14, 16  ;;  %v101_v24 = vmul.u32 2221713035, %v93_v16  ;;  %v102_v27 = vmul.u32 2221713035, %v94_v19 }
  0x2a   :  { %v113_v25 = vxor.u32 %v105_v17, %v97_v8  ;;  %v114_v26 = vxor.u32 %v106_v18, %v98_v9  ;;  %v103_v28 = vmul.u32 2221713035, %v95_v20  ;;  %v104_v31 = vmul.u32 2221713035, %v96_v23 }
  0x2b   :  { %v115_v29 = vxor.u32 %v107_v21, %v99_v13  ;;  %v116_v30 = vxor.u32 %v108_v22, %v100_v14  ;;  %v109_v32 = vshrl.u32 %v101_v24, 16  ;;  %v110_v33 = vshrl.u32 %v102_v27, 16 }
  0x2c   :  { %vm121_vm0 = vcmp.ge.u32.totalorder %v113_v25, 2147483648  ;;  %vm122_vm1 = vcmp.ge.u32.totalorder %v114_v26, 2147483648  ;;  %v111_v34 = vshrl.u32 %v103_v28, 16  ;;  %v112_v42 = vshrl.u32 %v104_v31, 16 }
  0x2d   :  { %vm123_vm2 = vcmp.ge.u32.totalorder %v115_v29, 2147483648  ;;  %vm124_vm3 = vcmp.ge.u32.totalorder %v116_v30, 2147483648  ;;  %v177_v35 = vsel %vm121_vm0, %v333_v37, 0.0  ;;  %v178_v36 = vsel %vm122_vm1, %v150_v45, 0.0 }
  0x2e   :  { %v179_v39 = vsel %vm123_vm2, %v336_v44, 0.0  ;;  %v180_v40 = vsel %vm124_vm3, %v151_v54, 0.0  ;;  %v193_v41 = vcombine.low %v177_v35, %v178_v36  ;;  %v117_v46 = vxor.u32 %v109_v32, %v101_v24 }
  0x2f   :  { %v194_v43 = vcombine.low %v179_v39, %v180_v40  ;;  %v118_v47 = vxor.u32 %v110_v33, %v102_v27  ;;  %v119_v48 = vxor.u32 %v111_v34, %v103_v28  ;;  %v132_v50 = vmul.f32 2.0, %v130_v38 }
  0x30   :  { %v201_v49 = vrot.slane %v193_v41, %v330_v11  ;;  %v120_v52 = vxor.u32 %v112_v42, %v104_v31  ;;  %vm125_vm4 = vcmp.ge.u32.totalorder %v117_v46, 2147483648 }
  0x31   :  { %v208_v51 = vrot.slane %v194_v43, %v330_v11  ;;  %v152_v53 = vcombine.high %v132_v50, %v132_v50  ;;  %v159_v37 = vrot.slane %v132_v50, %v330_v11  ;;  %vm126_vm5 = vcmp.ge.u32.totalorder %v118_v47, 2147483648 }
  0x32   :  { %vm127_vm6 = vcmp.ge.u32.totalorder %v119_v48, 2147483648  ;;  %vm128_vm7 = vcmp.ge.u32.totalorder %v120_v52, 2147483648 }
  0x33   :  { %v209_v45 = vcombine.low %v201_v49, %v208_v51  ;;  %v166_v44 = vrot.slane %v152_v53, %v330_v11  ;;  %v167_v54 = vcombine.high %v159_v37, %v159_v37  ;;  %v181_v55 = vsel %vm125_vm4, %v159_v37, 0.0 }
  0x35   :  { %229 = vst [vmem:[#allocation7] sm:$0xff] %v209_v45  ;;  %v168_v56 = vcombine.high %v166_v44, %v166_v44  ;;  %v182_v57 = vsel %vm126_vm5, %v167_v54, 0.0  ;;  %v183_v58 = vsel %vm127_vm6, %v166_v44, 0.0 }
  0x36   :  { %v210_v59 = vcombine.low %v181_v55, %v182_v57 }
  0x37   :  { %v184_v60 = vsel %vm128_vm7, %v168_v56, 0.0 }
  0x38   :  { %v211_v61 = vcombine.low %v183_v58, %v184_v60  ;;  %v218_v62 = vrot.slane %v210_v59, %v330_v11 }
  0x3a   :  { %v225_v63 = vrot.slane %v211_v61, %v330_v11 }
  0x3c   :  { %v226_v0 = vcombine.low %v218_v62, %v225_v63 }
  0x3e   :  { %230 = vst [vmem:[#allocation7 + $0x8] sm:$0xff] %v226_v0 }
  0x3f   :  { %282 = shalt.err (!%p279_p12)
}
  0x40   :  { %s283_s27 = scalar_lea.hbm %s364_s2, 256 }
  0x41   :  { %p284_p13 = scmp.ne.s32.totalorder %s364_s2, %s283_s27  ;;  %p287_p0 = scmp.lt.u32.totalorder %s283_s27, %s364_s2 }
  0x43   :  { %p289_p1 = pnand %p287_p0, %p284_p13 }
  0x45   :  { %292 = shalt.err (!%p289_p1)
}
  0x46   :  { %240 = dma.vmem_to_hbm [thread:$0]  %s238_s1, 256, %s364_s2, [#allocation6]  }
  0x47   :  { %295 = dma.done.wait [#allocation6], 256  }
  0x48   :  { %296 = vsyncadd [#allocation6], 4294967040 }
  0x49   :  { %244 = vsyncpa [#allocation5], 1 }
  0x4a   :  { %245 = vsyncpa [#allocation6], 1 }

</bundles_post_ra>
